<compile_context>
chip_gen: v6e
topology: v6e:2x2x1
jax: 0.10.0
libtpu: 0.0.40
codegen_flags: <defaults>
</compile_context>

<pallas_src>
import functools

import jax
import jax.numpy as jnp
from jax.experimental import pallas as pl
from jax.experimental.pallas import tpu as pltpu


def _round_up(a: int, b: int) -> int:
    return (a + b - 1) // b * b


def build_ae_chain(inchannels: int, ae_hidden, ae_latent: int):
    """Mirror AutoEncoder.__init__/forward: returns (layer dims, tanh flags).

    Chain: Cin -> h0 -> ... -> h_{L-1} -> latent -> h_{L-1} -> ... -> h0 -> Cin
    tanh on every layer except the very last decode conv.
    """
    if ae_latent <= 0:
        # TODO(synk): latent_chan == 0 path returns a learned constant `center`
        # parameter instead of a reconstruction; not implemented in-kernel.
        raise NotImplementedError("ae_latent == 0 (center-parameter AE) not supported")
    hidden = list(ae_hidden)
    dims = [inchannels] + hidden + [ae_latent] + list(reversed(hidden)) + [inchannels]
    num_layers = len(dims) - 1
    act_flags = tuple(j != num_layers - 1 for j in range(num_layers))
    return dims, act_flags


def _stack_weights(weights, mxu_dtype):
    """Stack per-class 1x1-conv weights so each layer is ONE matmul for all K AEs.

    weights: list of [K, d_out_j, d_in_j].
    Layer 0 (shared input x):          dense stack      [K*d_out0, Cin].
    Layers j>=1 (per-class activations): block-diagonal [K*d_out_j, K*d_in_j].
    """
    stacked = []
    for j, w in enumerate(weights):
        K, d_out, d_in = w.shape
        if j == 0:
            wj = w.reshape(K * d_out, d_in)
        else:
            wj = jax.scipy.linalg.block_diag(*[w[k] for k in range(K)])
        stacked.append(wj.astype(mxu_dtype))
    return stacked


def _csgrl_classifier_kernel(x_ref, *refs, num_layers, act_flags, use_l1,
                             reduction, clip_len, mxu_dtype):
    """x_ref: [Cin, T] (native dtype).  refs: num_layers stacked weights,
    selector [K, K*Cin], then out_ref [K, T] f32."""
    w_refs = refs[:num_layers]
    sel_ref = refs[num_layers]
    out_ref = refs[num_layers + 1]
    K = out_ref.shape[0]

    x = x_ref[...].astype(jnp.float32)                         # [Cin, T] f32 elementwise path
    z = x
    for j in range(num_layers):                                # static unroll over layers
        # bf16 MXU operands, f32 accumulation (single-pass MXU, no HIGHEST).
        z = jnp.dot(w_refs[j][...], z.astype(mxu_dtype),
                    preferred_element_type=jnp.float32)        # [K*d_out_j, T]
        if act_flags[j]:
            z = jnp.tanh(z)                                    # f32 on the EUP

    # z: stacked reconstructions for all K classes, [K*Cin, T].
    x_rep = jnp.concatenate([x] * K, axis=0)                   # [K*Cin, T]
    diff = z - x_rep
    e = jnp.abs(diff) if use_l1 else diff * diff               # f32, VPU

    # Per-class channel sums as one selector matmul -> lane-dense [K, T] block.
    err = jnp.dot(sel_ref[...], e.astype(mxu_dtype),
                  preferred_element_type=jnp.float32)
    err = err * jnp.float32(reduction)
    if clip_len > 0:
        err = jnp.clip(err, -jnp.float32(clip_len), jnp.float32(clip_len))
    out_ref[...] = err.astype(out_ref.dtype)


def csgrl_classifier_forward(x, weights, act_flags, *, use_l1, reduction,
                             clip_len=100.0, tile_hw=8192,
                             mxu_dtype=jnp.bfloat16):
    """x: [N, Cin, H, W] NCHW (any float dtype).
    weights: list of per-class 1x1-conv weights, layer j: [K, d_out_j, d_in_j]
    (PyTorch Conv2d weight [out, in, 1, 1] squeezed, stacked over the K AEs).
    Returns logits [N, K, H, W] float32."""
    N, Cin, H, W = x.shape
    K = weights[0].shape[0]
    HW = H * W

    stacked = _stack_weights(weights, mxu_dtype)
    # Block-of-ones selector: sel[k, k*Cin + c] = 1.
    sel = jnp.kron(jnp.eye(K, dtype=jnp.float32),
                   jnp.ones((1, Cin), dtype=jnp.float32)).astype(mxu_dtype)

    # Free reshape (trailing dims contiguous): no wrapper transposes / HBM passes.
    x3 = x.reshape(N, Cin, HW)

    # --- lane-tile sizing ---
    hw_aligned = _round_up(HW, 128)
    tile = max(128, min(_round_up(tile_hw, 128), hw_aligned))
    # v7x: keep >= ~8 grid steps so both TensorCores get work (never shrink
    # below 512 lanes); no effect on small spatial extents or v5e/v6e.
    while tile > 512 and N * pl.cdiv(hw_aligned, tile) < 8:
        tile = max(512, _round_up(tile // 2, 128))
    # VMEM guard: double-buffered in/out tiles + live stacked intermediates
    # (v7x: 64 MiB VMEM total, 32 MiB default scoped limit -> budget 16 MiB).
    max_rows = max([Cin, K] + [w.shape[0] for w in stacked])
    bytes_per_lane = (2 * Cin * x.dtype.itemsize   # double-buffered input tile
                      + 2 * K * 4                   # double-buffered f32 output tile
                      + 6 * max_rows * 4)           # live f32/bf16 intermediates
    vmem_budget = 16 * 1024 * 1024
    tile = min(tile, max(128, (vmem_budget // bytes_per_lane) // 128 * 128))

    hw_pad = _round_up(HW, tile)
    if hw_pad != HW:
        x3 = jnp.pad(x3, ((0, 0), (0, 0), (0, hw_pad - HW)))
    grid = (N, hw_pad // tile)

    kernel = functools.partial(
        _csgrl_classifier_kernel,
        num_layers=len(stacked), act_flags=tuple(act_flags),
        use_l1=bool(use_l1), reduction=float(reduction),
        clip_len=float(clip_len), mxu_dtype=mxu_dtype)

    # Leading batch dim blocked at size 1 and squeezed (None) out of the refs.
    in_specs = [pl.BlockSpec((None, Cin, tile), lambda n, i: (n, 0, i))]
    for w in stacked:
        # Tiny stacked weights: full block, constant index -> resident in VMEM.
        in_specs.append(pl.BlockSpec(w.shape, lambda n, i: (0, 0)))
    in_specs.append(pl.BlockSpec(sel.shape, lambda n, i: (0, 0)))

    out3 = pl.pallas_call(
        kernel,
        out_shape=jax.ShapeDtypeStruct((N, K, hw_pad), jnp.float32),
        grid=grid,
        in_specs=in_specs,
        out_specs=pl.BlockSpec((None, K, tile), lambda n, i: (n, 0, i)),
        compiler_params=pltpu.CompilerParams(
            dimension_semantics=("parallel", "parallel")),
    )(x3, *stacked, sel)

    # Slice off lane padding (no-op when HW is tile-aligned) and restore NCHW.
    return out3[..., :HW].reshape(N, K, H, W)


def _reference_forward(x, weights, act_flags, use_l1, reduction, clip_len):
    """Pure-f32 JAX reference mirroring the PyTorch CSGRLClassifier.forward."""
    K = weights[0].shape[0]
    xf = x.astype(jnp.float32)
    outs = []
    for k in range(K):
        z = xf
        for j, wj in enumerate(weights):
            z = jnp.einsum('oc,nchw->nohw', wj[k].astype(jnp.float32), z,
                           precision=jax.lax.Precision.HIGHEST)
            if act_flags[j]:
                z = jnp.tanh(z)
        diff = z - xf
        err = jnp.sum(jnp.abs(diff) if use_l1 else diff * diff, axis=1, keepdims=True)
        err = err * reduction
        if clip_len > 0:
            err = jnp.clip(err, -clip_len, clip_len)
        outs.append(err)
    return jnp.concatenate(outs, axis=1)


def _matched_reference(x, weights, act_flags, use_l1, reduction, clip_len,
                       mxu_dtype=jnp.bfloat16):
    """Reference mimicking the kernel's mixed precision (bf16 MXU operands,
    f32 accumulation/elementwise) while keeping the per-class structure of the
    PyTorch module -> validates the block-diag / selector restructuring."""
    K = weights[0].shape[0]
    xf = x.astype(jnp.float32)
    outs = []
    for k in range(K):
        z = xf
        for j, wj in enumerate(weights):
            z = jnp.einsum('oc,nchw->nohw', wj[k].astype(mxu_dtype),
                           z.astype(mxu_dtype),
                           preferred_element_type=jnp.float32)
            if act_flags[j]:
                z = jnp.tanh(z)
        diff = z - xf
        e = jnp.abs(diff) if use_l1 else diff * diff
        e = e.astype(mxu_dtype).astype(jnp.float32)   # selector-matmul operand cast
        err = jnp.sum(e, axis=1, keepdims=True) * reduction
        if clip_len > 0:
            err = jnp.clip(err, -clip_len, clip_len)
        outs.append(err)
    return jnp.concatenate(outs, axis=1)


if __name__ == "__main__":
    key = jax.random.PRNGKey(0)

    # Small config consistent with the module.
    inchannels, num_class = 4, 3
    N, H, W = 2, 16, 16
    config = {'ae_hidden': [8], 'ae_latent': 6, 'gamma': 0.5, 'model': 'csgrl'}
    clip_len = 100.0

    dims, act_flags = build_ae_chain(inchannels, config['ae_hidden'], config['ae_latent'])
    K = num_class + 1
    reduction = (-1.0 if config['model'] == 'csgrl' else 1.0) * config['gamma']

    keys = jax.random.split(key, len(dims))
    x = jax.random.normal(keys[0], (N, inchannels, H, W), dtype=jnp.float32)
    weights = [0.4 * jax.random.normal(keys[j + 1], (K, dims[j + 1], dims[j]),
                                       dtype=jnp.float32)
               for j in range(len(dims) - 1)]

    ok = True
    for error_measure in ('L2', 'L1'):
        use_l1 = (error_measure == 'L1')
        out = csgrl_classifier_forward(x, weights, act_flags, use_l1=use_l1,
                                       reduction=reduction, clip_len=clip_len)
        out = jax.block_until_ready(out)
        if out.shape != (N, K, H, W):
            ok = False
        # Tight check against a precision-matched (bf16-MXU) reference ...
        ref_m = _matched_reference(x, weights, act_flags, use_l1, reduction, clip_len)
        if not jnp.allclose(out, ref_m, rtol=1e-2, atol=1e-2):
            ok = False
        # ... and a looser sanity check against the exact f32 PyTorch-equivalent
        # reference (bf16 MXU operands cannot meet 1e-3 vs full f32 math).
        ref_f = _reference_forward(x, weights, act_flags, use_l1, reduction, clip_len)
        if not jnp.allclose(out, ref_f, rtol=5e-2, atol=5e-2):
            ok = False

    print("KERNEL_OK" if ok else "KERNEL_MISMATCH")
</pallas_src>

<mosaic_0001>
module attributes {stable_mosaic.version = 11 : i64} {
  func.func @_csgrl_classifier_kernel(%arg0: i32, %arg1: i32, %arg2: memref<1x4x256xf32, #tpu.memory_space<vmem>>, %arg3: memref<32x4xbf16, #tpu.memory_space<vmem>>, %arg4: memref<24x32xbf16, #tpu.memory_space<vmem>>, %arg5: memref<32x24xbf16, #tpu.memory_space<vmem>>, %arg6: memref<16x32xbf16, #tpu.memory_space<vmem>>, %arg7: memref<4x16xbf16, #tpu.memory_space<vmem>>, %arg8: memref<1x4x256xf32, #tpu.memory_space<vmem>>) attributes {dimension_semantics = [#tpu.dimension_semantics<parallel>, #tpu.dimension_semantics<parallel>], iteration_bounds = array<i64: 2, 1>, scalar_prefetch = 0 : i64, scratch_operands = 0 : i64, tpu.core_type = #tpu.core_type<tc>, window_params = [{transform_indices = @transform_0, window_bounds = array<i64: 1, 4, 256>}, {pipeline_mode = #tpu.pipeline_mode<synchronous>, transform_indices = @transform_1, window_bounds = array<i64: 32, 4>}, {pipeline_mode = #tpu.pipeline_mode<synchronous>, transform_indices = @transform_2, window_bounds = array<i64: 24, 32>}, {pipeline_mode = #tpu.pipeline_mode<synchronous>, transform_indices = @transform_3, window_bounds = array<i64: 32, 24>}, {pipeline_mode = #tpu.pipeline_mode<synchronous>, transform_indices = @transform_4, window_bounds = array<i64: 16, 32>}, {pipeline_mode = #tpu.pipeline_mode<synchronous>, transform_indices = @transform_5, window_bounds = array<i64: 4, 16>}, {transform_indices = @transform_6, window_bounds = array<i64: 1, 4, 256>}]} {
    %c0 = arith.constant 0 : index
    %c0_0 = arith.constant 0 : index
    %c0_1 = arith.constant 0 : index
    %0 = vector.load %arg2[%c0, %c0_0, %c0_1] : memref<1x4x256xf32, #tpu.memory_space<vmem>>, vector<1x4x256xf32>
    %1 = vector.shape_cast %0 : vector<1x4x256xf32> to vector<4x256xf32>
    %c0_2 = arith.constant 0 : index
    %c0_3 = arith.constant 0 : index
    %2 = vector.load %arg3[%c0_2, %c0_3] : memref<32x4xbf16, #tpu.memory_space<vmem>>, vector<32x4xbf16>
    %3 = arith.truncf %1 : vector<4x256xf32> to vector<4x256xbf16>
    %cst = arith.constant dense<0.000000e+00> : vector<32x256xf32>
    %4 = tpu.matmul %2, %3, %cst {dimension_numbers = #tpu.dot_dimension_numbers<[1], [0], [0], [1], [0, 0, 1, 1], [], []>} : vector<32x4xbf16>, vector<4x256xbf16>, vector<32x256xf32> -> vector<32x256xf32>
    %5 = math.tanh %4 : vector<32x256xf32>
    %c0_4 = arith.constant 0 : index
    %c0_5 = arith.constant 0 : index
    %6 = vector.load %arg4[%c0_4, %c0_5] : memref<24x32xbf16, #tpu.memory_space<vmem>>, vector<24x32xbf16>
    %7 = arith.truncf %5 : vector<32x256xf32> to vector<32x256xbf16>
    %cst_6 = arith.constant dense<0.000000e+00> : vector<24x256xf32>
    %8 = tpu.matmul %6, %7, %cst_6 {dimension_numbers = #tpu.dot_dimension_numbers<[1], [0], [0], [1], [0, 0, 1, 1], [], []>} : vector<24x32xbf16>, vector<32x256xbf16>, vector<24x256xf32> -> vector<24x256xf32>
    %9 = math.tanh %8 : vector<24x256xf32>
    %c0_7 = arith.constant 0 : index
    %c0_8 = arith.constant 0 : index
    %10 = vector.load %arg5[%c0_7, %c0_8] : memref<32x24xbf16, #tpu.memory_space<vmem>>, vector<32x24xbf16>
    %11 = arith.truncf %9 : vector<24x256xf32> to vector<24x256xbf16>
    %cst_9 = arith.constant dense<0.000000e+00> : vector<32x256xf32>
    %12 = tpu.matmul %10, %11, %cst_9 {dimension_numbers = #tpu.dot_dimension_numbers<[1], [0], [0], [1], [0, 0, 1, 1], [], []>} : vector<32x24xbf16>, vector<24x256xbf16>, vector<32x256xf32> -> vector<32x256xf32>
    %13 = math.tanh %12 : vector<32x256xf32>
    %c0_10 = arith.constant 0 : index
    %c0_11 = arith.constant 0 : index
    %14 = vector.load %arg6[%c0_10, %c0_11] : memref<16x32xbf16, #tpu.memory_space<vmem>>, vector<16x32xbf16>
    %15 = arith.truncf %13 : vector<32x256xf32> to vector<32x256xbf16>
    %cst_12 = arith.constant dense<0.000000e+00> : vector<16x256xf32>
    %16 = tpu.matmul %14, %15, %cst_12 {dimension_numbers = #tpu.dot_dimension_numbers<[1], [0], [0], [1], [0, 0, 1, 1], [], []>} : vector<16x32xbf16>, vector<32x256xbf16>, vector<16x256xf32> -> vector<16x256xf32>
    %17 = tpu.concatenate %1, %1, %1, %1 in 0 : vector<4x256xf32>, vector<4x256xf32>, vector<4x256xf32>, vector<4x256xf32> -> vector<16x256xf32>
    %18 = arith.subf %16, %17 : vector<16x256xf32>
    %19 = arith.mulf %18, %18 : vector<16x256xf32>
    %c0_13 = arith.constant 0 : index
    %c0_14 = arith.constant 0 : index
    %20 = vector.load %arg7[%c0_13, %c0_14] : memref<4x16xbf16, #tpu.memory_space<vmem>>, vector<4x16xbf16>
    %21 = arith.truncf %19 : vector<16x256xf32> to vector<16x256xbf16>
    %cst_15 = arith.constant dense<0.000000e+00> : vector<4x256xf32>
    %22 = tpu.matmul %20, %21, %cst_15 {dimension_numbers = #tpu.dot_dimension_numbers<[1], [0], [0], [1], [0, 0, 1, 1], [], []>} : vector<4x16xbf16>, vector<16x256xbf16>, vector<4x256xf32> -> vector<4x256xf32>
    %cst_16 = arith.constant -5.000000e-01 : f32
    %23 = vector.broadcast %cst_16 : f32 to vector<4x256xf32>
    %24 = arith.mulf %22, %23 : vector<4x256xf32>
    %cst_17 = arith.constant 0.000000e+00 : f32
    %cst_18 = arith.constant 1.000000e+02 : f32
    %25 = arith.subf %cst_17, %cst_18 : f32
    %cst_19 = arith.constant 1.000000e+02 : f32
    %26 = vector.broadcast %25 : f32 to vector<4x256xf32>
    %27 = arith.maximumf %26, %24 : vector<4x256xf32>
    %28 = vector.broadcast %cst_19 : f32 to vector<4x256xf32>
    %29 = arith.minimumf %28, %27 : vector<4x256xf32>
    %c0_20 = arith.constant 0 : index
    %c0_21 = arith.constant 0 : index
    %c0_22 = arith.constant 0 : index
    %30 = vector.load %arg8[%c0_20, %c0_21, %c0_22] : memref<1x4x256xf32, #tpu.memory_space<vmem>>, vector<1x4x256xf32>
    %31 = vector.shape_cast %30 : vector<1x4x256xf32> to vector<4x256xf32>
    %32 = vector.shape_cast %29 : vector<4x256xf32> to vector<1x4x256xf32>
    tpu.vector_store %arg8[%c0_20, %c0_21, %c0_22], %32 {strides = array<i32>} : memref<1x4x256xf32, #tpu.memory_space<vmem>>, vector<1x4x256xf32>,
    return
  }
  func.func @transform_0(%arg0: i32, %arg1: i32) -> (i32, i32, i32) {
    %c0_i32 = arith.constant 0 : i32
    %c0_i32_0 = arith.constant 0 : i32
    return %arg0, %c0_i32, %arg1 : i32, i32, i32
  }
  func.func @transform_1(%arg0: i32, %arg1: i32) -> (i32, i32) {
    %c0_i32 = arith.constant 0 : i32
    %c0_i32_0 = arith.constant 0 : i32
    %c0_i32_1 = arith.constant 0 : i32
    return %c0_i32, %c0_i32_0 : i32, i32
  }
  func.func @transform_2(%arg0: i32, %arg1: i32) -> (i32, i32) {
    %c0_i32 = arith.constant 0 : i32
    %c0_i32_0 = arith.constant 0 : i32
    %c0_i32_1 = arith.constant 0 : i32
    return %c0_i32, %c0_i32_0 : i32, i32
  }
  func.func @transform_3(%arg0: i32, %arg1: i32) -> (i32, i32) {
    %c0_i32 = arith.constant 0 : i32
    %c0_i32_0 = arith.constant 0 : i32
    %c0_i32_1 = arith.constant 0 : i32
    return %c0_i32, %c0_i32_0 : i32, i32
  }
  func.func @transform_4(%arg0: i32, %arg1: i32) -> (i32, i32) {
    %c0_i32 = arith.constant 0 : i32
    %c0_i32_0 = arith.constant 0 : i32
    %c0_i32_1 = arith.constant 0 : i32
    return %c0_i32, %c0_i32_0 : i32, i32
  }
  func.func @transform_5(%arg0: i32, %arg1: i32) -> (i32, i32) {
    %c0_i32 = arith.constant 0 : i32
    %c0_i32_0 = arith.constant 0 : i32
    %c0_i32_1 = arith.constant 0 : i32
    return %c0_i32, %c0_i32_0 : i32, i32
  }
  func.func @transform_6(%arg0: i32, %arg1: i32) -> (i32, i32, i32) {
    %c0_i32 = arith.constant 0 : i32
    %c0_i32_0 = arith.constant 0 : i32
    return %arg0, %c0_i32, %arg1 : i32, i32, i32
  }
}

</mosaic_0001>

<bundles_post_ra>
// kernel: tpu_custom_call.1
= control target key start
LH: loop header
LB: loop body
LE: loop exit
PB: predicated region body
PF: predicated region fallthrough
CT: control target
= control target key end

     0   :  { %11 = vsyncpa [#allocation3], 0  ;;  %s1181_s0 = inlined_call_operand.vmem [shape: f32[2,4,256], index: 0, kind: input, shape index: {}]   ;;  %s1182_s1 = inlined_call_operand.vmem [shape: bf16[32,4], index: 1, kind: input, shape index: {}]   ;;  %s1183_s2 = inlined_call_operand.vmem [shape: bf16[24,32], index: 2, kind: input, shape index: {}]   ;;  %s1184_s3 = inlined_call_operand.vmem [shape: bf16[32,24], index: 3, kind: input, shape index: {}]   ;;  %s1185_s4 = inlined_call_operand.vmem [shape: bf16[16,32], index: 4, kind: input, shape index: {}]   ;;  %s1186_s5 = inlined_call_operand.vmem [shape: bf16[4,16], index: 5, kind: input, shape index: {}]   ;;  %s1187_s6 = inlined_call_operand.hbm [shape: f32[2,4,256], index: 6, kind: output, shape index: {}]  }
   0x1   :  { %13 = vsyncpa [#allocation3 + $0x1], 0  ;;  %s1028_s21 = smov 0   ;;  %s1030_s22 = smov 0  }
   0x2   :  { %s1032_s23 = smov 0   ;;  %s1034_s24 = smov 0  }
   0x3   :  { %s1036_s25 = smov 0   ;;  %s1038_s26 = smov 0  }
   0x4 LB: > { %s770_s27 = sadd.s32 4294967295, %s989_s26   ;;  %s771_s28 = sadd.s32 4294967294, %s989_s26   ;;  %s989_s26 = sphi %s1038_s26, %s19_s26   ;;  %s985_s25 = sphi %s1036_s25, %s1194_s25   ;;  %s981_s24 = sphi %s1034_s24, %s1193_s24   ;;  %s977_s23 = sphi %s1032_s23, %s1192_s23   ;;  %s973_s22 = sphi %s1030_s22, %s1191_s22   ;;  %s969_s21 = sphi %s1028_s21, %s1190_s21  }
   0x5   : > { %s31_s29 = sadd.s32 1, %s985_s25  ;;  %s173_s30 = sadd.s32 1, %s977_s23 }
   0x6   : > { %p33_p0 = scmp.ge.s32.totalorder %s31_s29, 2  ;;  %p183_p1 = scmp.ne.s32.totalorder %s977_s23, %s973_s22 }
   0x7   : > { %p184_p2 = scmp.eq.s32.totalorder %s770_s27, 1  ;;  %p189_p3 = scmp.ne.s32.totalorder %s973_s22, %s969_s21 }
   0x8   : > { %s1196_s29 = smov (%p33_p0, %s31_s29), 0  ;;  %p190_p5 = scmp.eq.s32.totalorder %s771_s28, 1 }
   0x9   : > { %p1068_p4 = por %p184_p2, %p183_p1  ;;  %s168_s8 = ssub.s32 %s985_s25, %s1196_s29 }
   0xa   : > { %p774_p6 = scmp.ge.s32.totalorder %s989_s26, 1  ;;  %p171_p7 = scmp.eq.s32.totalorder %s168_s8, 0 }
   0xb   : > { %p1075_p8 = por %p190_p5, %p189_p3  ;;  %p236_p9 = scmp.lt.s32.totalorder %s989_s26, 3 }
   0xc   : > { %s1081_s10 = scalar_select %p171_p7, %s977_s23, %s173_s30  }
   0xd   : > { %p237_p10 = pnand %p774_p6, %p236_p9 }
   0xe   : > { %p271_p11 = scmp.lt.s32.totalorder (!%p237_p10), %s981_s24, 1  ;;  %s267_s18 = sand.u32 (!%p237_p10), 1, %s973_s22  }
   0xf   : > { %240 = sbr.rel (%p237_p10) target bundleno = 1145 (0x479), region = 44  ;;  %s775_s19 = sshll.u32 (!%p237_p10), %s267_s18, 3 }
  0x10   : > { %s803_s20 = sshll.u32 (!%p237_p10), %s981_s24, 7  ;;  %s269_s27 = scalar_lea.vmem (!%p237_p10), [#allocation2], %s775_s19 }
  0x11   : > { %s694_s28 = sshll.u32 (!%p237_p10), %s269_s27, 4  ;;  %s992_s14 = smov (!%p237_p10), [#allocation2]   ;;  %s695_s28 = int_to_ptr.vmem [resolvable:$true] %s694_s28 }
  0x12   : > { %s913_s13 = scalar_lea.vmem (!%p237_p10), %s695_s28, 128 }
  0x13   : > { %p914_p12 = scmp.ne.s32.totalorder (!%p237_p10), %s695_s28, %s913_s13 }
  0x14   : > { %v991_v0 = vmov 0   ;;  %s272_s11 = scalar_select %p271_p11, %s981_s24, 1  ;;  %vm309_vm0 = vcmask 1041408   ;;  %v861_v6 = vld [vmem:[%s1182_s1] sm:$0xff]   ;;  %vm302_vm1 = vcmask 31744   ;;  %v862_v7 = vld [vmem:[%s1182_s1 + $0x8] sm:$0xff]  }
  0x15   : > { %348 = vmatprep.mubr.bf16.mxu0 %v991_v0  ;;  %431 = vmatprep.mubr.bf16.mxu1 %v991_v0  ;;  %v863_v28 = vld [vmem:[%s1183_s2] sm:$0xff]   ;;  %vm392_vm2 = vcmask 261120   ;;  %v864_v29 = vld [vmem:[%s1183_s2 + $0x8] ss:$0 sps:$4 sm:$0xff]   ;;  %vm481_vm3 = vcmask 1043456   ;;  %vm474_vm4 = vcmask 195584   ;;  %p915_p13 = pnand %p914_p12, %p1068_p4 }
  0x16   : > { %s802_s12 = sshll.u32 %s272_s11, 3  ;;  %v865_v49 = vld [vmem:[%s1184_s3] sm:$0xff]   ;;  %v866_v50 = vld [vmem:[%s1184_s3 + $0x8] sm:$0xff]   ;;  %vm621_vm5 = vcmask 130048   ;;  %s692_s11 = scalar_lea.hbm %s1187_s6, %s803_s20 }
  0x17   : > { %s278_s15 = scalar_lea.vmem %s1181_s0, %s802_s12  ;;  %s678_s12 = scalar_lea.sflag [#allocation3], %s267_s18 }
  0x18   : > { %v1090_v1 = vld [vmem:[%s278_s15] sm:$0xff]  ;;  %p916_p0 = pneg %p915_p13  ;;  %s917_s24 = sshll.u32 %s992_s14, 4  ;;  %s918_s24 = int_to_ptr.vmem [resolvable:$false] %s917_s24 }
  0x19   : > { %v1094_v2 = vcombine.high %v1090_v1, %v1090_v1  ;;  %v290_v3 = vpack.c.bf16 %v1090_v1, %v1090_v1  ;;  %s919_s15 = scalar_lea.vmem %s918_s24, 256  ;;  %p920_p1 = scmp.lt.s32.totalorder %s695_s28, %s918_s24 }
  0x1a   : > { %p921_p2 = scmp.lt.s32.totalorder %s919_s15, %s913_s13 }
  0x1b   : > { %v291_v4 = vpack.c.bf16 %v1094_v2, %v1094_v2  ;;  %v311_v5 = vsel %vm309_vm0, %v290_v3, 0 }
  0x1c   : > { %p922_p3 = por %p921_p2, %p920_p1 }
  0x1d   : > { %780 = vmatprep.subr.msk.bf16.mxu0 %vm309_vm0, %v291_v4 }
  0x1e   : > { %331 = vmatpush1.bf16.msra.mxu0 %v311_v5  ;;  %p923_p5 = pnand %p922_p3, %p916_p0 }
  0x21   : > { %781 = vmatmul.mubr.msk.bf16.vlgmr.msra.gmra.mxu0 %vm302_vm1, %v861_v6 }
  0x22   : > { %358 = vmatprep.mubr.bf16.mxu0 %v991_v0 }
  0x29   : > { %782 = vmatmul.mubr.msk.bf16.gmra.mxu0 %vm302_vm1, %v862_v7 }
  0x2a   : > { %520 = vmatprep.mubr.bf16.mxu0 %v991_v0 }
  0xe1   : > { %v350_v8 = vpop.f32.mrf.mxu0 }
  0xe3   : > { %v352_v9 = vpop.f32.mrf.mxu0 }
  0xe5   : > { %v354_v10 = vpop.f32.mrf.mxu0 }
  0xe7   : > { %v356_v11 = vpop.f32.mrf.mxu0 }
  0xe8   : > { %869 = vtanh.f32 %v356_v11  ;;  %v606_v11 = vcombine.low %v1090_v1, %v1090_v1 }
  0xe9   : > { %v360_v12 = vpop.f32.mrf.mxu0 }
  0xeb   : > { %v362_v13 = vpop.f32.mrf.mxu0 }
  0xec   : > { %871 = vtanh.f32 %v362_v13 }
  0xed   : > { %v364_v14 = vpop.f32.mrf.mxu0 }
  0xee   : > { %873 = vtanh.f32 %v364_v14  ;;  %v609_v14 = vsel %vm481_vm3, %v1094_v2, %v1090_v1 }
  0xef   : > { %v366_v15 = vpop.f32.mrf.mxu0 }
  0xf0   : > { %875 = vtanh.f32 %v366_v15  ;;  %v608_v15 = vsel %vm481_vm3, %v1090_v1, %v606_v11  ;;  %v618_v1 = vld [vmem:[%s1186_s5] sm:$0x3] }
  0xf1   : > { %877 = vtanh.f32 %v360_v12 }
  0xf2   : > { %879 = vtanh.f32 %v352_v9 }
  0xf3   : > { %881 = vtanh.f32 %v354_v10  ;;  %v867_v10 = vld [vmem:[%s1185_s4] sm:$0xff]  }
  0xf4   : > { %883 = vtanh.f32 %v350_v8 }
  0xf5   : > { %v870_v16 = vpop.eup %869 }
  0xf9   : > { %v872_v17 = vpop.eup %871 }
  0xfb   : > { %v874_v18 = vpop.eup %873 }
  0xfd   : > { %v876_v19 = vpop.eup %875 }
  0xfe   : > { %v878_v20 = vpop.eup %877  ;;  %v383_v21 = vpack.c.bf16 %v876_v19, %v872_v17 }
  0xff   : > { %v880_v22 = vpop.eup %879  ;;  %v382_v23 = vpack.c.bf16 %v874_v18, %v878_v20 }
 0x100   : > { %v882_v24 = vpop.eup %881  ;;  %411 = vmatprep.subr.bf16.mxu1 %v383_v21  ;;  %v381_v25 = vpack.c.bf16 %v870_v16, %v880_v22 }
 0x101   : > { %412 = vmatpush1.bf16.msra.mxu1 %v382_v23  ;;  %v884_v26 = vpop.eup %883 }
 0x102   : > { %413 = vmatprep.subr.bf16.mxu1 %v381_v25  ;;  %v380_v27 = vpack.c.bf16 %v882_v24, %v884_v26 }
 0x105   : > { %414 = vmatpush1.bf16.msra.mxu1 %v380_v27 }
 0x108   : > { %785 = vmatmul.mubr.msk.bf16.vlgmr.msra.gmra.mxu1 %vm392_vm2, %v863_v28 }
 0x109   : > { %441 = vmatprep.mubr.bf16.mxu1 %v991_v0 }
 0x110   : > { %786 = vmatmul.mubr.msk.bf16.gmra.mxu1 %vm392_vm2, %v864_v29 }
 0x111   : > { %595 = vmatprep.mubr.bf16.mxu1 %v991_v0 }
 0x1c8   : > { %v433_v30 = vpop.f32.mrf.mxu1 }
 0x1ca   : > { %v435_v31 = vpop.f32.mrf.mxu1 }
 0x1cc   : > { %v437_v32 = vpop.f32.mrf.mxu1 }
 0x1ce   : > { %v439_v33 = vpop.f32.mrf.mxu1 }
 0x1d0   : > { %v443_v34 = vpop.f32.mrf.mxu1 }
 0x1d1   : > { %885 = vtanh.f32 %v443_v34 }
 0x1d2   : > { %887 = vtanh.f32 %v439_v33  ;;  %v445_v35 = vpop.f32.mrf.mxu1 }
 0x1d3   : > { %889 = vtanh.f32 %v445_v35 }
 0x1d4   : > { %v447_v36 = vpop.f32.mrf.mxu1  ;;  %891 = vtanh.f32 %v435_v31 }
 0x1d5   : > { %893 = vtanh.f32 %v437_v32 }
 0x1d6   : > { %v448_v37 = vpop.f32.mrf.mxu1  ;;  %895 = vtanh.f32 %v433_v30 }
 0x1de   : > { %v886_v38 = vpop.eup %885 }
 0x1df   : > { %v888_v39 = vpop.eup %887  ;;  %v462_v40 = vpack.c.bf16 %v886_v38, %v886_v38 }
 0x1e0   : > { %v890_v41 = vpop.eup %889 }
 0x1e1   : > { %v463_v42 = vpack.c.bf16 %v890_v41, %v890_v41  ;;  %v892_v43 = vpop.eup %891  ;;  %v483_v45 = vsel %vm481_vm3, %v462_v40, 0 }
 0x1e2   : > { %v894_v44 = vpop.eup %893  ;;  %v461_v46 = vpack.c.bf16 %v888_v39, %v892_v43 }
 0x1e3   : > { %789 = vmatprep.subr.msk.bf16.mxu0 %vm481_vm3, %v463_v42  ;;  %v896_v47 = vpop.eup %895 }
 0x1e4   : > { %501 = vmatpush1.bf16.msra.mxu0 %v483_v45  ;;  %v460_v48 = vpack.c.bf16 %v894_v44, %v896_v47 }
 0x1e5   : > { %502 = vmatprep.subr.bf16.mxu0 %v461_v46 }
 0x1e8   : > { %503 = vmatpush1.bf16.msra.mxu0 %v460_v48 }
 0x1eb   : > { %790 = vmatmul.mubr.msk.bf16.vlgmr.msra.gmra.mxu0 %vm474_vm4, %v865_v49 }
 0x1ec   : > { %530 = vmatprep.mubr.bf16.mxu0 %v991_v0 }
 0x1f3   : > { %791 = vmatmul.mubr.msk.bf16.gmra.mxu0 %vm474_vm4, %v866_v50 }
 0x2ab   : > { %v522_v51 = vpop.f32.mrf.mxu0 }
 0x2ad   : > { %v524_v52 = vpop.f32.mrf.mxu0 }
 0x2af   : > { %v526_v53 = vpop.f32.mrf.mxu0 }
 0x2b1   : > { %v528_v54 = vpop.f32.mrf.mxu0 }
 0x2b2   : > { %897 = vtanh.f32 %v528_v54 }
 0x2b3   : > { %v532_v55 = vpop.f32.mrf.mxu0 }
 0x2b5   : > { %v534_v56 = vpop.f32.mrf.mxu0 }
 0x2b6   : > { %899 = vtanh.f32 %v534_v56 }
 0x2b7   : > { %v536_v57 = vpop.f32.mrf.mxu0 }
 0x2b8   : > { %901 = vtanh.f32 %v536_v57 }
 0x2b9   : > { %v538_v58 = vpop.f32.mrf.mxu0 }
 0x2ba   : > { %903 = vtanh.f32 %v538_v58 }
 0x2bb   : > { %905 = vtanh.f32 %v532_v55 }
 0x2bc   : > { %907 = vtanh.f32 %v524_v52 }
 0x2bd   : > { %909 = vtanh.f32 %v526_v53 }
 0x2be   : > { %911 = vtanh.f32 %v522_v51 }
 0x2bf   : > { %v898_v59 = vpop.eup %897 }
 0x2c3   : > { %v900_v60 = vpop.eup %899 }
 0x2c5   : > { %v902_v61 = vpop.eup %901 }
 0x2c7   : > { %v904_v62 = vpop.eup %903 }
 0x2c8   : > { %v906_v63 = vpop.eup %905  ;;  %v554_v3 = vpack.c.bf16 %v904_v62, %v900_v60 }
 0x2c9   : > { %v908_v4 = vpop.eup %907  ;;  %v553_v5 = vpack.c.bf16 %v902_v61, %v906_v63 }
 0x2ca   : > { %v910_v6 = vpop.eup %909  ;;  %575 = vmatprep.subr.bf16.mxu1 %v554_v3  ;;  %v552_v7 = vpack.c.bf16 %v898_v59, %v908_v4 }
 0x2cb   : > { %576 = vmatpush1.bf16.msra.mxu1 %v553_v5  ;;  %v912_v8 = vpop.eup %911 }
 0x2cc   : > { %577 = vmatprep.subr.bf16.mxu1 %v552_v7  ;;  %v551_v9 = vpack.c.bf16 %v910_v6, %v912_v8 }
 0x2cf   : > { %578 = vmatpush1.bf16.msra.mxu1 %v551_v9 }
 0x2d2   : > { %793 = vmatmul.mubr.msk.bf16.vlgmr.msra.gmra.mxu1 %vm392_vm2, %v867_v10 }
 0x2d3   : > { %657 = vmatprep.mubr.bf16.mxu1 %v991_v0 }
 0x392   : > { %v597_v12 = vpop.f32.mrf.mxu1 }
 0x393   : > { %v610_v19 = vsub.f32 %v597_v12, %v608_v15 }
 0x394   : > { %v599_v13 = vpop.f32.mrf.mxu1 }
 0x395   : > { %v611_v17 = vsub.f32 %v599_v13, %v609_v14  ;;  %v614_v24 = vmul.f32 %v610_v19, %v610_v19 }
 0x396   : > { %v601_v16 = vpop.f32.mrf.mxu1 }
 0x397   : > { %v612_v18 = vsub.f32 %v601_v16, %v608_v15  ;;  %v615_v22 = vmul.f32 %v611_v17, %v611_v17 }
 0x398   : > { %v603_v20 = vpop.f32.mrf.mxu1 }
 0x399   : > { %v613_v21 = vsub.f32 %v603_v20, %v609_v14  ;;  %v616_v0 = vmul.f32 %v612_v18, %v612_v18 }
 0x39b   : > { %v617_v23 = vmul.f32 %v613_v21, %v613_v21  ;;  %v619_v26 = vpack.c.bf16 %v616_v0, %v614_v24 }
 0x39d   : > { %v620_v25 = vpack.c.bf16 %v617_v23, %v615_v22 }
 0x39f   : > { %639 = vmatprep.subr.bf16.mxu1 %v620_v25 }
 0x3a0   : > { %640 = vmatpush1.bf16.msra.mxu1 %v619_v26 }
 0x3a3   : > { %794 = vmatmul.mubr.msk.bf16.vlgmr.msra.gmra.mxu1 %vm621_vm5, %v618_v1 }
 0x463   : > { %v659_v2 = vpop.f32.mrf.mxu1 }
 0x464   : > { %v666_v27 = vmul.f32 -0.5, %v659_v2 }
 0x465   : > { %v661_v28 = vpop.f32.mrf.mxu1 }
 0x466   : > { %v667_v29 = vmul.f32 -0.5, %v661_v28  ;;  %v795_v31 = vclamps-f32 %v666_v27, 100.0 }
 0x467   : > { %v663_v30 = vpop.f32.mrf.mxu1 }
 0x468   : > { %v796_v32 = vclamps-f32 %v667_v29, 100.0 }
 0x469   : > { %v664_v33 = vpop.f32.mrf.mxu1 }
 0x46a   : > { %v674_v34 = vcombine.low %v795_v31, %v796_v32 }
 0x46c   : > { %676 = vst [vmem:[%s269_s27] sm:$0xff] %v674_v34 }
 0x46d   : > { %926 = shalt.err (!%p923_p5)
}
 0x46e   : > { %s927_s16 = scalar_lea.hbm %s692_s11, 128  ;;  %s931_s19 = scalar_lea.hbm %s1187_s6, 256 }
 0x46f   : > { %p928_p6 = scmp.ne.s32.totalorder %s692_s11, %s927_s16  ;;  %p932_p10 = scmp.lt.s32.totalorder %s692_s11, %s1187_s6 }
 0x470   : > { %p933_p11 = scmp.lt.s32.totalorder %s931_s19, %s927_s16 }
 0x471   : > { %p929_p7 = pnand %p928_p6, %p1068_p4 }
 0x472   : > { %p934_p12 = por %p933_p11, %p932_p10 }
 0x473   : > { %p930_p9 = pneg %p929_p7 }
 0x475   : > { %p935_p13 = pnand %p934_p12, %p930_p9 }
 0x477   : > { %938 = shalt.err (!%p935_p13)
}
 0x478   : > { %804 = dma.vmem_to_hbm [thread:$0]  (%p1068_p4), %s695_s28, 128, %s692_s11, %s678_s12  }
 0x479 PF: > { %p810_p0 = scmp.ge.s32.totalorder %s989_s26, 2  ;;  %s706_s30 = sand.u32 1, %s969_s21  }
 0x47a   : > { %s707_s8 = scalar_lea.sflag [#allocation3], %s706_s30 }
 0x47b   : > { %p807_p1 = pnand %p810_p0, %p1075_p8 }
 0x47d   : > { %p808_p2 = pneg %p807_p1 }
 0x47f   : > { %964 = dma.done.wait (%p808_p2), %s707_s8, 128  }
 0x480   : > { %966 = vsyncadd (%p808_p2), %s707_s8, 4294967168  ;;  %s19_s26 = sadd.s32 1, %s989_s26   ;;  %s1190_s21 = smov %s973_s22 }
 0x481   : > { %p16_p3 = scmp.ge.s32.totalorder %s19_s26, 4   ;;  %s1191_s22 = smov %s977_s23 }
 0x482   : > { %s1192_s23 = smov %s1081_s10  ;;  %s1193_s24 = smov %s985_s25 }
 0x483   : > { %s1194_s25 = smov %s1196_s29  ;;  %18 = sbr.rel (!%p16_p3) target bundleno = 4 (0x4), region = 79 }
 0x488   :  { %712 = vsyncpa [#allocation3], 1 }
 0x489   :  { %714 = vsyncpa [#allocation3 + $0x1], 1 }

</bundles_post_ra>
